<compile_context>
chip_gen: v6e
topology: v6e:2x2x1
jax: 0.10.0
libtpu: 0.0.40
codegen_flags: <defaults>
</compile_context>

<pallas_src>
import jax
import jax.numpy as jnp
from jax.experimental import pallas as pl
from jax.experimental.pallas import tpu as pltpu


def _rnet_a_kernel(alpha_ref, x_ref, w_ref, b_ref, o_ref):
    # alpha_ref: (1, 1) SMEM scalar (shared PReLU slope)
    # x_ref: (1, Cin, THW) VMEM   w_ref: (Cout, Cin) VMEM   b_ref: (Cout, 1) VMEM
    # o_ref: (1, Cout, THW) VMEM
    y = jnp.dot(w_ref[...], x_ref[0], preferred_element_type=jnp.float32)
    y = y + b_ref[...]                      # (Cout, 1) broadcasts over lanes
    alpha = alpha_ref[0, 0]
    y = jnp.where(y > 0, y, alpha * y)      # PReLU (single shared parameter)
    o_ref[0] = y.astype(o_ref.dtype)


def rnet_a_forward(x_nchw, weight, bias, prelu_alpha, *, tile_hw=2048,
                   use_bf16=False):
    """x_nchw: (N, 256, H, W); weight: (64, 256, 1, 1); bias: (64,).

    tile_hw: spatial tile (lane dim).  2048 keeps the double-buffered VMEM
    footprint ~5 MiB (safe under the default scoped VMEM on v5e/v6e/v7x)
    while being well past the HBM-roofline knee; bump to 4096 on v6e/v7x if
    desired.
    use_bf16: optionally cast x / weight to bf16 (f32 MXU accumulate) to
    halve the HBM read traffic on this bandwidth-bound kernel.
    """
    n, cin, h, w = x_nchw.shape
    cout = weight.shape[0]
    hw = h * w

    # Free, row-major reshapes — no HBM transpose traffic.
    x3d = x_nchw.reshape(n, cin, hw)                   # (N, Cin, HW)
    w2d = weight.reshape(cout, cin)                    # (Cout, Cin)
    b2d = bias.reshape(cout, 1)                        # (Cout, 1)
    a2d = jnp.asarray(prelu_alpha, jnp.float32).reshape(1, 1)

    if use_bf16:
        x3d = x3d.astype(jnp.bfloat16)
        w2d = w2d.astype(jnp.bfloat16)

    # Lane-dense spatial tile.  If the whole image fits in one tile use the
    # full extent (always a legal block shape); otherwise use a multiple of
    # 128 so every store is an unmasked vst and the ragged last block is
    # handled by Pallas' output masking.
    if hw <= tile_hw:
        thw = hw
    else:
        thw = (tile_hw // 128) * 128
    grid = (n, pl.cdiv(hw, thw))

    out3d = pl.pallas_call(
        _rnet_a_kernel,
        out_shape=jax.ShapeDtypeStruct((n, cout, hw), x_nchw.dtype),
        grid_spec=pltpu.PrefetchScalarGridSpec(
            num_scalar_prefetch=0,
            grid=grid,
            in_specs=[
                pl.BlockSpec(memory_space=pltpu.SMEM),                     # alpha
                pl.BlockSpec((1, cin, thw), lambda ni, ji: (ni, 0, ji)),   # x tile
                pl.BlockSpec((cout, cin), lambda ni, ji: (0, 0)),          # weight (resident)
                pl.BlockSpec((cout, 1), lambda ni, ji: (0, 0)),            # bias (resident)
            ],
            out_specs=pl.BlockSpec((1, cout, thw), lambda ni, ji: (ni, 0, ji)),
        ),
        compiler_params=pltpu.CompilerParams(
            dimension_semantics=("parallel", "parallel")),
    )(a2d, x3d, w2d, b2d)

    return out3d.reshape(n, cout, h, w)


def init_params(key, cin=256, cout=64):
    kw, kb = jax.random.split(key)
    # Deterministic synthetic init (shapes match nn.Conv2d(256, 64, 1) + PReLU()).
    bound = 1.0 / jnp.sqrt(cin)
    weight = jax.random.uniform(kw, (cout, cin, 1, 1), jnp.float32, -bound, bound)
    bias = jax.random.uniform(kb, (cout,), jnp.float32, -bound, bound)
    prelu_alpha = jnp.float32(0.25)   # torch default PReLU init
    return weight, bias, prelu_alpha


if __name__ == "__main__":
    key = jax.random.PRNGKey(0)
    kx, kp = jax.random.split(key)

    # The module fixes Cin=256, Cout=64; keep batch/spatial small.
    N, CIN, H, W = 2, 256, 16, 16
    x = jax.random.normal(kx, (N, CIN, H, W), jnp.float32)
    weight, bias, alpha = init_params(kp)

    out = jax.block_until_ready(rnet_a_forward(x, weight, bias, alpha))

    # Pure-JAX reference (1x1 conv == channel matmul + bias + PReLU), in NCHW.
    ref = jnp.einsum('oc,nchw->nohw', weight.reshape(64, CIN), x) \
        + bias[None, :, None, None]
    ref = jnp.where(ref > 0, ref, alpha * ref)

    assert out.shape == (N, 64, H, W)
    assert jnp.allclose(out, ref, atol=1e-4, rtol=1e-4)

    print("KERNEL_OK")
</pallas_src>

<mosaic_0001>
module attributes {stable_mosaic.version = 11 : i64} {
  func.func @_rnet_a_kernel(%arg0: i32, %arg1: i32, %arg2: memref<1x1xf32, #tpu.memory_space<smem>>, %arg3: memref<1x256x256xf32, #tpu.memory_space<vmem>>, %arg4: memref<64x256xf32, #tpu.memory_space<vmem>>, %arg5: memref<64x1xf32, #tpu.memory_space<vmem>>, %arg6: memref<1x64x256xf32, #tpu.memory_space<vmem>>) attributes {dimension_semantics = [#tpu.dimension_semantics<parallel>, #tpu.dimension_semantics<parallel>], iteration_bounds = array<i64: 2, 1>, scalar_prefetch = 0 : i64, scratch_operands = 0 : i64, tpu.core_type = #tpu.core_type<tc>, window_params = [{transform_indices = @transform_0, window_bounds = array<i64: 1, 1>}, {transform_indices = @transform_1, window_bounds = array<i64: 1, 256, 256>}, {pipeline_mode = #tpu.pipeline_mode<synchronous>, transform_indices = @transform_2, window_bounds = array<i64: 64, 256>}, {pipeline_mode = #tpu.pipeline_mode<synchronous>, transform_indices = @transform_3, window_bounds = array<i64: 64, 1>}, {transform_indices = @transform_4, window_bounds = array<i64: 1, 64, 256>}]} {
    %c0 = arith.constant 0 : index
    %c0_0 = arith.constant 0 : index
    %0 = vector.load %arg4[%c0, %c0_0] : memref<64x256xf32, #tpu.memory_space<vmem>>, vector<64x256xf32>
    %c0_1 = arith.constant 0 : index
    %c0_2 = arith.constant 0 : index
    %c0_3 = arith.constant 0 : index
    %1 = vector.load %arg3[%c0_1, %c0_2, %c0_3] : memref<1x256x256xf32, #tpu.memory_space<vmem>>, vector<1x256x256xf32>
    %2 = vector.shape_cast %1 : vector<1x256x256xf32> to vector<256x256xf32>
    %cst = arith.constant dense<0.000000e+00> : vector<64x256xf32>
    %3 = tpu.matmul %0, %2, %cst {dimension_numbers = #tpu.dot_dimension_numbers<[1], [0], [0], [1], [0, 0, 1, 1], [], []>} : vector<64x256xf32>, vector<256x256xf32>, vector<64x256xf32> -> vector<64x256xf32>
    %c0_4 = arith.constant 0 : index
    %c0_5 = arith.constant 0 : index
    %4 = vector.load %arg5[%c0_4, %c0_5] : memref<64x1xf32, #tpu.memory_space<vmem>>, vector<64x1xf32>
    %5 = vector.broadcast %4 : vector<64x1xf32> to vector<64x256xf32>
    %6 = arith.addf %3, %5 : vector<64x256xf32>
    %c0_6 = arith.constant 0 : index
    %c0_7 = arith.constant 0 : index
    %7 = memref.load %arg2[%c0_6, %c0_7] : memref<1x1xf32, #tpu.memory_space<smem>>
    %cst_8 = arith.constant 0.000000e+00 : f32
    %8 = vector.broadcast %cst_8 : f32 to vector<64x256xf32>
    %9 = arith.cmpf ogt, %6, %8 : vector<64x256xf32>
    %10 = vector.broadcast %7 : f32 to vector<64x256xf32>
    %11 = arith.mulf %10, %6 : vector<64x256xf32>
    %12 = arith.select %9, %6, %11 : vector<64x256xi1>, vector<64x256xf32>
    %c0_9 = arith.constant 0 : index
    %c0_10 = arith.constant 0 : index
    %c0_11 = arith.constant 0 : index
    %13 = vector.load %arg6[%c0_9, %c0_10, %c0_11] : memref<1x64x256xf32, #tpu.memory_space<vmem>>, vector<1x64x256xf32>
    %14 = vector.shape_cast %13 : vector<1x64x256xf32> to vector<64x256xf32>
    %15 = vector.shape_cast %12 : vector<64x256xf32> to vector<1x64x256xf32>
    tpu.vector_store %arg6[%c0_9, %c0_10, %c0_11], %15 {strides = array<i32>} : memref<1x64x256xf32, #tpu.memory_space<vmem>>, vector<1x64x256xf32>,
    return
  }
  func.func @transform_0(%arg0: i32, %arg1: i32) -> (i32, i32) {
    %c0_i32 = arith.constant 0 : i32
    %c0_i32_0 = arith.constant 0 : i32
    %c0_i32_1 = arith.constant 0 : i32
    return %c0_i32, %c0_i32_0 : i32, i32
  }
  func.func @transform_1(%arg0: i32, %arg1: i32) -> (i32, i32, i32) {
    %c0_i32 = arith.constant 0 : i32
    %c0_i32_0 = arith.constant 0 : i32
    return %arg0, %c0_i32, %arg1 : i32, i32, i32
  }
  func.func @transform_2(%arg0: i32, %arg1: i32) -> (i32, i32) {
    %c0_i32 = arith.constant 0 : i32
    %c0_i32_0 = arith.constant 0 : i32
    %c0_i32_1 = arith.constant 0 : i32
    return %c0_i32, %c0_i32_0 : i32, i32
  }
  func.func @transform_3(%arg0: i32, %arg1: i32) -> (i32, i32) {
    %c0_i32 = arith.constant 0 : i32
    %c0_i32_0 = arith.constant 0 : i32
    %c0_i32_1 = arith.constant 0 : i32
    return %c0_i32, %c0_i32_0 : i32, i32
  }
  func.func @transform_4(%arg0: i32, %arg1: i32) -> (i32, i32, i32) {
    %c0_i32 = arith.constant 0 : i32
    %c0_i32_0 = arith.constant 0 : i32
    return %arg0, %c0_i32, %arg1 : i32, i32, i32
  }
}

</mosaic_0001>

<bundles_post_ra>
// kernel: tpu_custom_call.1
= control target key start
LH: loop header
LB: loop body
LE: loop exit
PB: predicated region body
PF: predicated region fallthrough
CT: control target
= control target key end

     0   :  { %s1334_s0 = inlined_call_operand.<no memory space> [shape: f32[1,1], index: 0, kind: input, shape index: {}]   ;;  %s1335_s1 = inlined_call_operand.hbm [shape: f32[2,256,256], index: 1, kind: input, shape index: {}]   ;;  %s1336_s2 = inlined_call_operand.hbm [shape: f32[64,256], index: 2, kind: input, shape index: {}]   ;;  %s1337_s3 = inlined_call_operand.vmem [shape: f32[64,1], index: 3, kind: input, shape index: {}]   ;;  %s1338_s4 = inlined_call_operand.hbm [shape: f32[2,64,256], index: 4, kind: output, shape index: {}]  }
   0x1   :  { %9 = sst [smem:[#allocation2]] %s1334_s0 }
   0x2   :  { %10 = vsyncpa [#allocation4], 0 }
   0x3   :  { %12 = vsyncpa [#allocation4 + $0x1], 0 }
   0x4   :  { %13 = vsyncpa [#allocation7], 0 }
   0x5   :  { %14 = vsyncpa [#allocation5], 0 }
   0x6   :  { %16 = vsyncpa [#allocation5 + $0x1], 0  ;;  %s1011_s17 = smov 0   ;;  %s1013_s18 = smov 0  }
   0x7   :  { %s1015_s19 = smov 0   ;;  %s1017_s20 = smov 0  }
   0x8   :  { %s1019_s21 = smov 0   ;;  %s1021_s22 = smov 0  }
   0x9 LB: > { %s672_s0 = sadd.s32 4294967295, %s973_s22   ;;  %s673_s23 = sadd.s32 4294967294, %s973_s22   ;;  %s973_s22 = sphi %s1021_s22, %s22_s22   ;;  %s969_s21 = sphi %s1019_s21, %s1360_s21   ;;  %s965_s20 = sphi %s1017_s20, %s1359_s20   ;;  %s961_s19 = sphi %s1015_s19, %s1358_s19   ;;  %s957_s18 = sphi %s1013_s18, %s1357_s18   ;;  %s953_s17 = sphi %s1011_s17, %s1356_s17  }
   0xa   : > { %p77_p0 = scmp.ne.s32.totalorder %s957_s18, %s953_s17  ;;  %p1045_p1 = scmp.eq.s32.totalorder %s672_s0, 0 }
   0xb   : > { %p1049_p2 = scmp.eq.s32.totalorder %s672_s0, 1  ;;  %p151_p3 = scmp.eq.s32.totalorder %s673_s23, 1 }
   0xc   : > { %p1055_p4 = por %p1045_p1, %p77_p0  ;;  %p674_p5 = scmp.ge.s32.totalorder %s973_s22, 1 }
   0xd   : > { %p1060_p6 = por %p151_p3, %p77_p0  ;;  %p158_p7 = scmp.lt.s32.totalorder %s973_s22, 3 }
   0xe   : > { %s1344_s26 = scalar_select %p1055_p4, 1, 0 }
   0xf   : > { %s1345_s27 = scalar_select %p1060_p6, 1, 0 }
  0x10   : > { %p1065_p8 = pnand %p674_p5, %p158_p7  ;;  %s975_s29 = smov [#allocation6]  }
  0x11   : > { %s173_s30 = sshll.u32 %s975_s29, 4  ;;  %s34_s6 = sadd.s32 1, %s969_s21  ;;  %s174_s30 = int_to_ptr.vmem [resolvable:$true] %s173_s30 }
  0x12   : > { %p763_p9 = pneg %p1065_p8  ;;  %s846_s7 = scalar_lea.vmem %s174_s30, 2048 }
  0x13   : > { %p847_p13 = scmp.ne.s32.totalorder %s174_s30, %s846_s7  ;;  %p854_p5 = scmp.lt.s32.totalorder %s174_s30, %s174_s30 }
  0x14   : > { %p1074_p11 = pnand %p763_p9, %p1045_p1  ;;  %p855_p7 = scmp.lt.s32.totalorder %s846_s7, %s846_s7 }
  0x16   : > { %p837_p12 = pneg %p1074_p11  ;;  %p856_p6 = por %p855_p7, %p854_p5 }
  0x18   : > { %p849_p0 = pnand %p847_p13, %p837_p12 }
  0x1a   : > { %p850_p3 = pneg %p849_p0 }
  0x1c   : > { %p857_p4 = pnand %p856_p6, %p850_p3 }
  0x1e   : > { %860 = shalt.err (!%p857_p4)
}
  0x1f   : > { %s1340_s8 = smov 256   ;;  %s1341_s9 = smov 16  }
  0x20   : > { %766 = dma.hbm_to_vmem [thread:$0]  (!%p1074_p11), %s1336_s2, 2048, %s174_s30, [#allocation7], %s1340_s8, %s1340_s8, %s1341_s9  }
  0x21   : > { %p36_p4 = scmp.ge.s32.totalorder %s34_s6, 2  ;;  %s64_s12 = sadd.s32 1, %s961_s19 }
  0x22   : > { %p71_p6 = scmp.ne.s32.totalorder %s961_s19, %s957_s18  ;;  %p72_p9 = scmp.eq.s32.totalorder %s973_s22, 0 }
  0x23   : > { %s1362_s6 = smov (%p36_p4, %s34_s6), 0  ;;  %p776_p0 = scmp.lt.s32.totalorder %s973_s22, 2 }
  0x24   : > { %p1095_p12 = por %p72_p9, %p71_p6  ;;  %p1101_p13 = por %p1049_p2, %p71_p6 }
  0x25   : > { %s59_s15 = ssub.s32 %s969_s21, %s1362_s6  ;;  %s190_s16 = sand.u32 1, %s961_s19  }
  0x26   : > { %p62_p11 = scmp.eq.s32.totalorder %s59_s15, 0  ;;  %s677_s0 = sshll.u32 %s190_s16, 9 }
  0x27   : > { %s689_s29 = sshll.u32 %s969_s21, 13  ;;  %s194_s10 = scalar_lea.vmem [#allocation3], %s677_s0 }
  0x28   : > { %s1110_s23 = scalar_select %p62_p11, %s961_s19, %s64_s12  }
  0x29   : > { %s202_s7 = scalar_lea.hbm %s1335_s1, %s689_s29  ;;  %s203_s11 = sshll.u32 %s194_s10, 4  ;;  %s204_s11 = int_to_ptr.vmem [resolvable:$true] %s203_s11 }
  0x2a   : > { %p1118_p2 = pnand %p776_p0, %p1095_p12  ;;  %s191_s8 = scalar_lea.sflag [#allocation4], %s190_s16 }
  0x2b   : > { %s874_s15 = scalar_lea.vmem %s204_s11, 8192  ;;  %s978_s12 = smov [#allocation3]  }
  0x2c   : > { %p863_p3 = pneg %p1118_p2  ;;  %p875_p5 = scmp.ne.s32.totalorder %s204_s11, %s874_s15 }
  0x2d   : > { %s879_s9 = sshll.u32 %s978_s12, 4  ;;  %s880_s9 = int_to_ptr.vmem [resolvable:$false] %s879_s9 }
  0x2e   : > { %p877_p7 = pnand %p875_p5, %p863_p3  ;;  %s881_s29 = scalar_lea.vmem %s880_s9, 16384 }
  0x2f   : > { %p882_p6 = scmp.lt.s32.totalorder %s204_s11, %s880_s9  ;;  %p883_p9 = scmp.lt.s32.totalorder %s881_s29, %s874_s15 }
  0x30   : > { %p878_p4 = pneg %p877_p7 }
  0x31   : > { %p884_p11 = por %p883_p9, %p882_p6 }
  0x33   : > { %p885_p10 = pnand %p884_p11, %p878_p4 }
  0x35   : > { %888 = shalt.err (!%p885_p10)
}
  0x36   : > { %s1351_s13 = smov 16   ;;  %s1352_s0 = smov 256  }
  0x37   : > { %770 = dma.hbm_to_vmem [thread:$0]  (!%p1118_p2), %s202_s7, 8192, %s204_s11, %s191_s8, %s1352_s0, %s1352_s0, %s1351_s13  }
  0x38   : > { %215 = sbr.rel (%p1065_p8) target bundleno = 359 (0x167), region = 36  ;;  %s1132_s16 = sand.u32 (!%p1065_p8), 1, %s957_s18  }
  0x39   : > { %s681_s9 = sshll.u32 (!%p1065_p8), %s1132_s16, 9  ;;  %s218_s30 = scalar_lea.sflag (!%p1065_p8), [#allocation4], %s1132_s16 }
  0x3a   : > { %s1136_s5 = scalar_lea.vmem (!%p1065_p8), [#allocation3], %s681_s9  ;;  %p1353_p10 = scmp.ne.s32.totalorder (!%p1065_p8), %s1344_s26, 0 }
  0x3d   : > { %940 = dma.done.wait (%p1353_p10), %s218_s30, 8192  }
  0x3e   : > { %942 = vsyncadd (%p1353_p10), %s218_s30, 4294959104 }
  0x3f   : > { %944 = dma.done.wait (%p1045_p1), [#allocation7], 2048  }
  0x40   : > { %946 = vsyncadd (%p1045_p1), [#allocation7], 4294965248  ;;  %v979_v0 = vmov 0   ;;  %v299_v1 = vld [vmem:[%s1136_s5 + $0xf8] sm:$0xff]  ;;  %v298_v2 = vld [vmem:[%s1136_s5 + $0xf0] sm:$0xff]  ;;  %s493_s24 = sld [smem:[#allocation2]] }
  0x41   : > { %834 = vset.pattern.permute.xlu1 %v979_v0  ;;  %833 = vset.pattern.permute.xlu0 %v979_v0  ;;  %v297_v3 = vld [vmem:[%s1136_s5 + $0xe8] sm:$0xff]  ;;  %v296_v4 = vld [vmem:[%s1136_s5 + $0xe0] sm:$0xff]  ;;  %v295_v5 = vld [vmem:[%s1136_s5 + $0xd8] sm:$0xff]  ;;  %s683_s26 = sshll.u32 %s1132_s16, 7  ;;  %s690_s8 = sshll.u32 %s965_s20, 11 }
  0x42   : > { %380 = vmatprep.subr.mxu0 %v299_v1  ;;  %691 = vmatprep.subr.mxu1 %v299_v1  ;;  %v294_v6 = vld [vmem:[%s1136_s5 + $0xd0] sm:$0xff]  ;;  %v293_v7 = vld [vmem:[%s1136_s5 + $0xc8] sm:$0xff]  ;;  %v292_v8 = vld [vmem:[%s1136_s5 + $0xc0] sm:$0xff]  ;;  %s1243_s28 = scalar_lea.vmem [#allocation8], %s683_s26  ;;  %s1282_s11 = scalar_lea.hbm %s1338_s4, %s690_s8 }
  0x43   : > { %381 = vmatpush1.msra.mxu0 %v298_v2  ;;  %723 = vmatpush1.msra.mxu1 %v298_v2  ;;  %v291_v9 = vld [vmem:[%s1136_s5 + $0xb8] sm:$0xff]  ;;  %v290_v10 = vld [vmem:[%s1136_s5 + $0xb0] sm:$0xff]  ;;  %v289_v11 = vld [vmem:[%s1136_s5 + $0xa8] sm:$0xff]  ;;  %s575_s7 = sshll.u32 %s1243_s28, 4  ;;  %s560_s25 = scalar_lea.sflag [#allocation5], %s1132_s16  ;;  %s1284_s7 = int_to_ptr.vmem [resolvable:$true] %s575_s7 }
  0x44   : > { %382 = vmatprep.subr.mxu0 %v297_v3  ;;  %692 = vmatprep.subr.mxu1 %v297_v3  ;;  %v288_v12 = vld [vmem:[%s1136_s5 + $0xa0] sm:$0xff]  ;;  %v287_v13 = vld [vmem:[%s1136_s5 + $0x98] sm:$0xff]  ;;  %v286_v14 = vld [vmem:[%s1136_s5 + $0x90] sm:$0xff]  ;;  %s889_s15 = scalar_lea.vmem %s1284_s7, 2048  ;;  %s980_s12 = smov [#allocation8]  }
  0x45   : > { %383 = vmatpush1.msra.mxu0 %v296_v4  ;;  %724 = vmatpush1.msra.mxu1 %v296_v4  ;;  %v285_v15 = vld [vmem:[%s1136_s5 + $0x88] sm:$0xff]  ;;  %v284_v16 = vld [vmem:[%s1136_s5 + $0x80] sm:$0xff]  ;;  %v283_v17 = vld [vmem:[%s1136_s5 + $0x78] sm:$0xff]  ;;  %p890_p1 = scmp.ne.s32.totalorder %s1284_s7, %s889_s15  ;;  %s893_s29 = sshll.u32 %s980_s12, 4  ;;  %s894_s29 = int_to_ptr.vmem [resolvable:$false] %s893_s29 }
  0x46   : > { %384 = vmatprep.subr.mxu0 %v295_v5  ;;  %693 = vmatprep.subr.mxu1 %v295_v5  ;;  %v282_v18 = vld [vmem:[%s1136_s5 + $0x70] sm:$0xff]  ;;  %v281_v19 = vld [vmem:[%s1136_s5 + $0x68] sm:$0xff]  ;;  %v280_v20 = vld [vmem:[%s1136_s5 + $0x60] sm:$0xff]  ;;  %s895_s13 = scalar_lea.vmem %s894_s29, 4096  ;;  %p896_p0 = scmp.lt.s32.totalorder %s1284_s7, %s894_s29 }
  0x47   : > { %385 = vmatpush1.msra.mxu0 %v294_v6  ;;  %725 = vmatpush1.msra.mxu1 %v294_v6  ;;  %v279_v21 = vld [vmem:[%s1136_s5 + $0x58] sm:$0xff]  ;;  %v278_v22 = vld [vmem:[%s1136_s5 + $0x50] sm:$0xff]  ;;  %v277_v23 = vld [vmem:[%s1136_s5 + $0x48] sm:$0xff]  ;;  %p891_p8 = pnand %p890_p1, %p1101_p13  ;;  %p897_p2 = scmp.lt.s32.totalorder %s895_s13, %s889_s15 }
  0x48   : > { %386 = vmatprep.subr.mxu0 %v293_v7  ;;  %694 = vmatprep.subr.mxu1 %v293_v7  ;;  %v276_v24 = vld [vmem:[%s1136_s5 + $0x40] sm:$0xff]  ;;  %v275_v25 = vld [vmem:[%s1136_s5 + $0x38] sm:$0xff]  ;;  %v274_v26 = vld [vmem:[%s1136_s5 + $0x30] sm:$0xff] }
  0x49   : > { %387 = vmatpush1.msra.mxu0 %v292_v8  ;;  %726 = vmatpush1.msra.mxu1 %v292_v8  ;;  %v273_v27 = vld [vmem:[%s1136_s5 + $0x28] sm:$0xff]  ;;  %v272_v28 = vld [vmem:[%s1136_s5 + $0x20] sm:$0xff]  ;;  %v271_v29 = vld [vmem:[%s1136_s5 + $0x18] sm:$0xff]  ;;  %p892_p12 = pneg %p891_p8  ;;  %p898_p3 = por %p897_p2, %p896_p0 }
  0x4a   : > { %388 = vmatprep.subr.mxu0 %v291_v9  ;;  %695 = vmatprep.subr.mxu1 %v291_v9  ;;  %v270_v30 = vld [vmem:[%s1136_s5 + $0x10] sm:$0xff]  ;;  %v269_v31 = vld [vmem:[%s1136_s5 + $0x8] sm:$0xff]  ;;  %v268_v32 = vld [vmem:[%s1136_s5] sm:$0xff] }
  0x4b   : > { %389 = vmatpush1.msra.mxu0 %v290_v10  ;;  %727 = vmatpush1.msra.mxu1 %v290_v10  ;;  %v331_v33 = vld [vmem:[%s1136_s5 + $0x1f8] sm:$0xff]  ;;  %v330_v34 = vld [vmem:[%s1136_s5 + $0x1f0] sm:$0xff]  ;;  %v329_v35 = vld [vmem:[%s1136_s5 + $0x1e8] sm:$0xff]  ;;  %p899_p5 = pnand %p898_p3, %p892_p12 }
  0x4c   : > { %390 = vmatprep.subr.mxu0 %v289_v11  ;;  %696 = vmatprep.subr.mxu1 %v289_v11  ;;  %v328_v36 = vld [vmem:[%s1136_s5 + $0x1e0] sm:$0xff]  ;;  %v327_v37 = vld [vmem:[%s1136_s5 + $0x1d8] sm:$0xff]  ;;  %v326_v38 = vld [vmem:[%s1136_s5 + $0x1d0] sm:$0xff] }
  0x4d   : > { %391 = vmatpush1.msra.mxu0 %v288_v12  ;;  %728 = vmatpush1.msra.mxu1 %v288_v12  ;;  %v325_v39 = vld [vmem:[%s1136_s5 + $0x1c8] sm:$0xff]  ;;  %v324_v40 = vld [vmem:[%s1136_s5 + $0x1c0] sm:$0xff]  ;;  %v323_v41 = vld [vmem:[%s1136_s5 + $0x1b8] sm:$0xff] }
  0x4e   : > { %392 = vmatprep.subr.mxu0 %v287_v13  ;;  %697 = vmatprep.subr.mxu1 %v287_v13  ;;  %v322_v42 = vld [vmem:[%s1136_s5 + $0x1b0] sm:$0xff]  ;;  %v321_v43 = vld [vmem:[%s1136_s5 + $0x1a8] sm:$0xff]  ;;  %v320_v44 = vld [vmem:[%s1136_s5 + $0x1a0] sm:$0xff] }
  0x4f   : > { %393 = vmatpush1.msra.mxu0 %v286_v14  ;;  %729 = vmatpush1.msra.mxu1 %v286_v14  ;;  %v319_v45 = vld [vmem:[%s1136_s5 + $0x198] sm:$0xff]  ;;  %v318_v46 = vld [vmem:[%s1136_s5 + $0x190] sm:$0xff]  ;;  %v317_v47 = vld [vmem:[%s1136_s5 + $0x188] sm:$0xff] }
  0x50   : > { %394 = vmatprep.subr.mxu0 %v285_v15  ;;  %698 = vmatprep.subr.mxu1 %v285_v15  ;;  %v316_v48 = vld [vmem:[%s1136_s5 + $0x180] sm:$0xff]  ;;  %v315_v49 = vld [vmem:[%s1136_s5 + $0x178] sm:$0xff]  ;;  %v314_v50 = vld [vmem:[%s1136_s5 + $0x170] sm:$0xff] }
  0x51   : > { %395 = vmatpush1.msra.mxu0 %v284_v16  ;;  %730 = vmatpush1.msra.mxu1 %v284_v16  ;;  %v313_v51 = vld [vmem:[%s1136_s5 + $0x168] sm:$0xff]  ;;  %v312_v52 = vld [vmem:[%s1136_s5 + $0x160] sm:$0xff]  ;;  %v311_v53 = vld [vmem:[%s1136_s5 + $0x158] sm:$0xff] }
  0x52   : > { %396 = vmatprep.subr.mxu0 %v283_v17  ;;  %699 = vmatprep.subr.mxu1 %v283_v17  ;;  %v310_v54 = vld [vmem:[%s1136_s5 + $0x150] sm:$0xff]  ;;  %v309_v55 = vld [vmem:[%s1136_s5 + $0x148] sm:$0xff]  ;;  %v308_v56 = vld [vmem:[%s1136_s5 + $0x140] sm:$0xff] }
  0x53   : > { %397 = vmatpush1.msra.mxu0 %v282_v18  ;;  %731 = vmatpush1.msra.mxu1 %v282_v18  ;;  %v307_v57 = vld [vmem:[%s1136_s5 + $0x138] sm:$0xff]  ;;  %v306_v58 = vld [vmem:[%s1136_s5 + $0x130] sm:$0xff]  ;;  %v305_v59 = vld [vmem:[%s1136_s5 + $0x128] sm:$0xff] }
  0x54   : > { %398 = vmatprep.subr.mxu0 %v281_v19  ;;  %700 = vmatprep.subr.mxu1 %v281_v19  ;;  %v304_v60 = vld [vmem:[%s1136_s5 + $0x120] sm:$0xff]  ;;  %v303_v61 = vld [vmem:[%s1136_s5 + $0x118] sm:$0xff]  ;;  %v302_v62 = vld [vmem:[%s1136_s5 + $0x110] sm:$0xff] }
  0x55   : > { %399 = vmatpush1.msra.mxu0 %v280_v20  ;;  %732 = vmatpush1.msra.mxu1 %v280_v20  ;;  %v301_v63 = vld [vmem:[%s1136_s5 + $0x108] sm:$0xff]  ;;  %v300_v0 = vld [vmem:[%s1136_s5 + $0x100] sm:$0xff]  ;;  %v255_v5 = vld [vmem:[#allocation6 + $0x18] sm:$0xff] }
  0x56   : > { %400 = vmatprep.subr.mxu0 %v279_v21  ;;  %701 = vmatprep.subr.mxu1 %v279_v21  ;;  %v253_v1 = vld [vmem:[#allocation6 + $0x8] sm:$0xff]  ;;  %v252_v3 = vld [vmem:[#allocation6] sm:$0xff]  ;;  %v263_v6 = vld [vmem:[#allocation6 + $0x58] sm:$0xff] }
  0x57   : > { %401 = vmatpush1.msra.mxu0 %v278_v22  ;;  %733 = vmatpush1.msra.mxu1 %v278_v22  ;;  %v261_v2 = vld [vmem:[#allocation6 + $0x48] sm:$0xff]  ;;  %v260_v4 = vld [vmem:[#allocation6 + $0x40] sm:$0xff]  ;;  %v334_v7 = vld [vmem:[%s1337_s3 + $0x10] sm:$0xff] }
  0x58   : > { %402 = vmatprep.subr.mxu0 %v277_v23  ;;  %702 = vmatprep.subr.mxu1 %v277_v23  ;;  %v332_v8 = vld [vmem:[%s1337_s3] sm:$0xff]  ;;  %v254_v9 = vld [vmem:[#allocation6 + $0x10] sm:$0xff]  ;;  %v257_v11 = vld [vmem:[#allocation6 + $0x28] sm:$0xff] }
  0x59   : > { %403 = vmatpush1.msra.mxu0 %v276_v24  ;;  %734 = vmatpush1.msra.mxu1 %v276_v24  ;;  %v262_v10 = vld [vmem:[#allocation6 + $0x50] sm:$0xff]  ;;  %v265_v12 = vld [vmem:[#allocation6 + $0x68] sm:$0xff]  ;;  %v335_v13 = vld [vmem:[%s1337_s3 + $0x18] sm:$0xff] }
  0x5a   : > { %404 = vmatprep.subr.mxu0 %v275_v25  ;;  %703 = vmatprep.subr.mxu1 %v275_v25  ;;  %v333_v14 = vld [vmem:[%s1337_s3 + $0x8] sm:$0xff]  ;;  %v256_v15 = vld [vmem:[#allocation6 + $0x20] sm:$0xff]  ;;  %v259_v17 = vld [vmem:[#allocation6 + $0x38] sm:$0xff] }
  0x5b   : > { %405 = vmatpush1.msra.mxu0 %v274_v26  ;;  %735 = vmatpush1.msra.mxu1 %v274_v26  ;;  %v264_v16 = vld [vmem:[#allocation6 + $0x60] sm:$0xff]  ;;  %v267_v18 = vld [vmem:[#allocation6 + $0x78] sm:$0xff]  ;;  %v337_v19 = vld [vmem:[%s1337_s3 + $0x28] sm:$0xff] }
  0x5c   : > { %406 = vmatprep.subr.mxu0 %v273_v27  ;;  %704 = vmatprep.subr.mxu1 %v273_v27  ;;  %v336_v20 = vld [vmem:[%s1337_s3 + $0x20] sm:$0xff]  ;;  %v258_v21 = vld [vmem:[#allocation6 + $0x30] sm:$0xff]  ;;  %v339_v23 = vld [vmem:[%s1337_s3 + $0x38] sm:$0xff] }
  0x5d   : > { %407 = vmatpush1.msra.mxu0 %v272_v28  ;;  %736 = vmatpush1.msra.mxu1 %v272_v28  ;;  %v266_v22 = vld [vmem:[#allocation6 + $0x70] sm:$0xff] }
  0x5e   : > { %408 = vmatprep.subr.mxu0 %v271_v29  ;;  %705 = vmatprep.subr.mxu1 %v271_v29  ;;  %v338_v24 = vld [vmem:[%s1337_s3 + $0x30] sm:$0xff] }
  0x5f   : > { %409 = vmatpush1.msra.mxu0 %v270_v30  ;;  %737 = vmatpush1.msra.mxu1 %v270_v30 }
  0x60   : > { %410 = vmatprep.subr.mxu0 %v269_v31  ;;  %706 = vmatprep.subr.mxu1 %v269_v31  ;;  %v1239_v31 = vstv %s493_s24 }
  0x61   : > { %411 = vmatpush1.msra.mxu0 %v268_v32  ;;  %738 = vmatpush1.msra.mxu1 %v268_v32 }
  0x62   : > { %412 = vmatprep.subr.mxu0 %v331_v33  ;;  %707 = vmatprep.subr.mxu1 %v331_v33 }
  0x63   : > { %413 = vmatpush2.msra.mxu0 %v330_v34  ;;  %739 = vmatpush2.msra.mxu1 %v330_v34 }
  0x64   : > { %414 = vmatprep.subr.mxu0 %v329_v35  ;;  %708 = vmatprep.subr.mxu1 %v329_v35 }
  0x65   : > { %415 = vmatpush2.msra.mxu0 %v328_v36  ;;  %740 = vmatpush2.msra.mxu1 %v328_v36 }
  0x66   : > { %416 = vmatprep.subr.mxu0 %v327_v37  ;;  %709 = vmatprep.subr.mxu1 %v327_v37 }
  0x67   : > { %417 = vmatpush2.msra.mxu0 %v326_v38  ;;  %741 = vmatpush2.msra.mxu1 %v326_v38 }
  0x68   : > { %418 = vmatprep.subr.mxu0 %v325_v39  ;;  %710 = vmatprep.subr.mxu1 %v325_v39 }
  0x69   : > { %419 = vmatpush2.msra.mxu0 %v324_v40  ;;  %742 = vmatpush2.msra.mxu1 %v324_v40 }
  0x6a   : > { %420 = vmatprep.subr.mxu0 %v323_v41  ;;  %711 = vmatprep.subr.mxu1 %v323_v41 }
  0x6b   : > { %421 = vmatpush2.msra.mxu0 %v322_v42  ;;  %743 = vmatpush2.msra.mxu1 %v322_v42 }
  0x6c   : > { %422 = vmatprep.subr.mxu0 %v321_v43  ;;  %712 = vmatprep.subr.mxu1 %v321_v43 }
  0x6d   : > { %423 = vmatpush2.msra.mxu0 %v320_v44  ;;  %744 = vmatpush2.msra.mxu1 %v320_v44 }
  0x6e   : > { %424 = vmatprep.subr.mxu0 %v319_v45  ;;  %713 = vmatprep.subr.mxu1 %v319_v45 }
  0x6f   : > { %425 = vmatpush2.msra.mxu0 %v318_v46  ;;  %745 = vmatpush2.msra.mxu1 %v318_v46 }
  0x70   : > { %426 = vmatprep.subr.mxu0 %v317_v47  ;;  %714 = vmatprep.subr.mxu1 %v317_v47 }
  0x71   : > { %427 = vmatpush2.msra.mxu0 %v316_v48  ;;  %746 = vmatpush2.msra.mxu1 %v316_v48 }
  0x72   : > { %428 = vmatprep.subr.mxu0 %v315_v49  ;;  %715 = vmatprep.subr.mxu1 %v315_v49 }
  0x73   : > { %429 = vmatpush2.msra.mxu0 %v314_v50  ;;  %747 = vmatpush2.msra.mxu1 %v314_v50 }
  0x74   : > { %430 = vmatprep.subr.mxu0 %v313_v51  ;;  %716 = vmatprep.subr.mxu1 %v313_v51 }
  0x75   : > { %431 = vmatpush2.msra.mxu0 %v312_v52  ;;  %748 = vmatpush2.msra.mxu1 %v312_v52 }
  0x76   : > { %432 = vmatprep.subr.mxu0 %v311_v53  ;;  %717 = vmatprep.subr.mxu1 %v311_v53 }
  0x77   : > { %433 = vmatpush2.msra.mxu0 %v310_v54  ;;  %749 = vmatpush2.msra.mxu1 %v310_v54 }
  0x78   : > { %434 = vmatprep.subr.mxu0 %v309_v55  ;;  %718 = vmatprep.subr.mxu1 %v309_v55 }
  0x79   : > { %435 = vmatpush2.msra.mxu0 %v308_v56  ;;  %750 = vmatpush2.msra.mxu1 %v308_v56 }
  0x7a   : > { %436 = vmatprep.subr.mxu0 %v307_v57  ;;  %719 = vmatprep.subr.mxu1 %v307_v57 }
  0x7b   : > { %437 = vmatpush2.msra.mxu0 %v306_v58  ;;  %751 = vmatpush2.msra.mxu1 %v306_v58 }
  0x7c   : > { %438 = vmatprep.subr.mxu0 %v305_v59  ;;  %720 = vmatprep.subr.mxu1 %v305_v59 }
  0x7d   : > { %439 = vmatpush2.msra.mxu0 %v304_v60  ;;  %752 = vmatpush2.msra.mxu1 %v304_v60 }
  0x7e   : > { %440 = vmatprep.subr.mxu0 %v303_v61  ;;  %721 = vmatprep.subr.mxu1 %v303_v61 }
  0x7f   : > { %441 = vmatpush2.msra.mxu0 %v302_v62  ;;  %753 = vmatpush2.msra.mxu1 %v302_v62 }
  0x80   : > { %442 = vmatprep.subr.mxu0 %v301_v63  ;;  %722 = vmatprep.subr.mxu1 %v301_v63 }
  0x81   : > { %443 = vmatpush2.msra.mxu0 %v300_v0  ;;  %754 = vmatpush2.msra.mxu1 %v300_v0 }
  0x82   : > { %444 = vmatprep.mubr.f32.mxu0 %v253_v1  ;;  %468 = vmatprep.mubr.f32.mxu1 %v261_v2 }
  0x83   : > { %445 = vmatmul.mubr.f32.vlgmr.msra.gmra.mxu0 %v252_v3  ;;  %469 = vmatmul.mubr.f32.vlgmr.msra.gmra.mxu1 %v260_v4 }
  0x84   : > { %450 = vmatprep.mubr.f32.mxu0 %v255_v5  ;;  %474 = vmatprep.mubr.f32.mxu1 %v263_v6 }
  0x85   : > { %352 = vperm.xlu1 %834, %v334_v7   ;;  %342 = vperm.xlu0 %833, %v332_v8  }
  0x87   : > { %451 = vmatmul.mubr.f32.gmra.mxu0 %v254_v9  ;;  %475 = vmatmul.mubr.f32.gmra.mxu1 %v262_v10 }
  0x88   : > { %456 = vmatprep.mubr.f32.mxu0 %v257_v11  ;;  %480 = vmatprep.mubr.f32.mxu1 %v265_v12 }
  0x89   : > { %357 = vperm.xlu1 %834, %v335_v13   ;;  %347 = vperm.xlu0 %833, %v333_v14  }
  0x8b   : > { %457 = vmatmul.mubr.f32.gmra.mxu0 %v256_v15  ;;  %481 = vmatmul.mubr.f32.gmra.mxu1 %v264_v16 }
  0x8c   : > { %462 = vmatprep.mubr.f32.mxu0 %v259_v17  ;;  %486 = vmatprep.mubr.f32.mxu1 %v267_v18 }
  0x8d   : > { %367 = vperm.xlu1 %834, %v337_v19   ;;  %362 = vperm.xlu0 %833, %v336_v20  }
  0x8f   : > { %463 = vmatmul.mubr.f32.gmra.mxu0 %v258_v21  ;;  %487 = vmatmul.mubr.f32.gmra.mxu1 %v266_v22 }
  0x91   : > { %377 = vperm.xlu1 %834, %v339_v23   ;;  %372 = vperm.xlu0 %833, %v338_v24  }
 0x100   : > { %v343_v25 = vpop.permute.xlu0 %342  ;;  %v1234_v26 = vpop.permute.xlu1 %352 }
 0x104   : > { %v348_v27 = vpop.permute.xlu0 %347  ;;  %v1236_v28 = vpop.permute.xlu1 %357 }
 0x108   : > { %v363_v29 = vpop.permute.xlu0 %362  ;;  %v368_v37 = vpop.permute.xlu1 %367 }
 0x10c   : > { %v373_v52 = vpop.permute.xlu0 %372  ;;  %v378_v5 = vpop.permute.xlu1 %377 }
 0x143   : > { %v446_v30 = vpop.f32.mrf.mxu0  ;;  %v470_v32 = vpop.f32.mrf.mxu1 }
 0x144   : > { %v447_v33 = vadd.f32 %v446_v30, %v343_v25  ;;  %v471_v34 = vadd.f32 %v470_v32, %v363_v29 }
 0x145   : > { %v448_v35 = vpop.f32.mrf.mxu0  ;;  %v472_v36 = vpop.f32.mrf.mxu1 }
 0x146   : > { %vm494_vm0 = vcmp.gt.f32.partialorder %v447_v33, 0.0  ;;  %v511_v38 = vmul.f32 %v1239_v31, %v447_v33  ;;  %vm502_vm1 = vcmp.gt.f32.partialorder %v471_v34, 0.0  ;;  %v519_v39 = vmul.f32 %v1239_v31, %v471_v34 }
 0x147   : > { %v449_v40 = vadd.f32 %v448_v35, %v343_v25  ;;  %v473_v41 = vadd.f32 %v472_v36, %v363_v29  ;;  %v452_v42 = vpop.f32.mrf.mxu0  ;;  %v476_v43 = vpop.f32.mrf.mxu1 }
 0x148   : > { %v527_v44 = vsel %vm494_vm0, %v447_v33, %v511_v38  ;;  %v535_v45 = vsel %vm502_vm1, %v471_v34, %v519_v39  ;;  %v453_v46 = vadd.f32 %v452_v42, %v348_v27  ;;  %v477_v47 = vadd.f32 %v476_v43, %v368_v37 }
 0x149   : > { %543 = vst [vmem:[%s1243_s28] sm:$0xff] %v527_v44  ;;  %551 = vst [vmem:[%s1243_s28 + $0x40] sm:$0xff] %v535_v45  ;;  %vm495_vm2 = vcmp.gt.f32.partialorder %v449_v40, 0.0  ;;  %v512_v48 = vmul.f32 %v1239_v31, %v449_v40  ;;  %vm503_vm3 = vcmp.gt.f32.partialorder %v473_v41, 0.0  ;;  %v520_v49 = vmul.f32 %v1239_v31, %v473_v41  ;;  %v454_v50 = vpop.f32.mrf.mxu0  ;;  %v478_v51 = vpop.f32.mrf.mxu1 }
 0x14a   : > { %vm496_vm4 = vcmp.gt.f32.partialorder %v453_v46, 0.0  ;;  %v513_v53 = vmul.f32 %v1239_v31, %v453_v46  ;;  %vm504_vm5 = vcmp.gt.f32.partialorder %v477_v47, 0.0  ;;  %v521_v54 = vmul.f32 %v1239_v31, %v477_v47 }
 0x14b   : > { %v528_v55 = vsel %vm495_vm2, %v449_v40, %v512_v48  ;;  %v536_v56 = vsel %vm503_vm3, %v473_v41, %v520_v49  ;;  %v455_v57 = vadd.f32 %v454_v50, %v348_v27  ;;  %v479_v58 = vadd.f32 %v478_v51, %v368_v37  ;;  %v458_v59 = vpop.f32.mrf.mxu0  ;;  %v482_v60 = vpop.f32.mrf.mxu1 }
 0x14c   : > { %544 = vst [vmem:[%s1243_s28 + $0x8] sm:$0xff] %v528_v55  ;;  %552 = vst [vmem:[%s1243_s28 + $0x48] sm:$0xff] %v536_v56  ;;  %v529_v61 = vsel %vm496_vm4, %v453_v46, %v513_v53  ;;  %v537_v62 = vsel %vm504_vm5, %v477_v47, %v521_v54  ;;  %v459_v63 = vadd.f32 %v458_v59, %v1234_v26 }
 0x14d   : > { %v483_v0 = vadd.f32 %v482_v60, %v373_v52  ;;  %545 = vst [vmem:[%s1243_s28 + $0x10] sm:$0xff] %v529_v61  ;;  %553 = vst [vmem:[%s1243_s28 + $0x50] sm:$0xff] %v537_v62  ;;  %vm497_vm6 = vcmp.gt.f32.partialorder %v455_v57, 0.0  ;;  %v514_v1 = vmul.f32 %v1239_v31, %v455_v57  ;;  %vm505_vm7 = vcmp.gt.f32.partialorder %v479_v58, 0.0  ;;  %v460_v3 = vpop.f32.mrf.mxu0  ;;  %v484_v4 = vpop.f32.mrf.mxu1 }
 0x14e   : > { %v522_v2 = vmul.f32 %v1239_v31, %v479_v58  ;;  %vm498_vm8 = vcmp.gt.f32.partialorder %v459_v63, 0.0  ;;  %v515_v6 = vmul.f32 %v1239_v31, %v459_v63  ;;  %v461_v10 = vadd.f32 %v460_v3, %v1234_v26 }
 0x14f   : > { %vm506_vm9 = vcmp.gt.f32.partialorder %v483_v0, 0.0  ;;  %v523_v7 = vmul.f32 %v1239_v31, %v483_v0  ;;  %v530_v8 = vsel %vm497_vm6, %v455_v57, %v514_v1  ;;  %v485_v11 = vadd.f32 %v484_v4, %v373_v52  ;;  %v464_v12 = vpop.f32.mrf.mxu0  ;;  %v488_v13 = vpop.f32.mrf.mxu1 }
 0x150   : > { %v538_v9 = vsel %vm505_vm7, %v479_v58, %v522_v2  ;;  %546 = vst [vmem:[%s1243_s28 + $0x18] sm:$0xff] %v530_v8  ;;  %v531_v14 = vsel %vm498_vm8, %v459_v63, %v515_v6  ;;  %v465_v16 = vadd.f32 %v464_v12, %v1236_v28  ;;  %v489_v17 = vadd.f32 %v488_v13, %v378_v5 }
 0x151   : > { %554 = vst [vmem:[%s1243_s28 + $0x58] sm:$0xff] %v538_v9  ;;  %v539_v15 = vsel %vm506_vm9, %v483_v0, %v523_v7  ;;  %547 = vst [vmem:[%s1243_s28 + $0x20] sm:$0xff] %v531_v14  ;;  %vm499_vm10 = vcmp.gt.f32.partialorder %v461_v10, 0.0  ;;  %v516_v18 = vmul.f32 %v1239_v31, %v461_v10  ;;  %vm507_vm11 = vcmp.gt.f32.partialorder %v485_v11, 0.0  ;;  %v466_v20 = vpop.f32.mrf.mxu0  ;;  %v490_v21 = vpop.f32.mrf.mxu1 }
 0x152   : > { %555 = vst [vmem:[%s1243_s28 + $0x60] sm:$0xff] %v539_v15  ;;  %v524_v19 = vmul.f32 %v1239_v31, %v485_v11  ;;  %vm500_vm12 = vcmp.gt.f32.partialorder %v465_v16, 0.0  ;;  %v517_v22 = vmul.f32 %v1239_v31, %v465_v16  ;;  %vm508_vm13 = vcmp.gt.f32.partialorder %v489_v17, 0.0 }
 0x153   : > { %v525_v23 = vmul.f32 %v1239_v31, %v489_v17  ;;  %v532_v24 = vsel %vm499_vm10, %v461_v10, %v516_v18  ;;  %v467_v26 = vadd.f32 %v466_v20, %v1236_v28  ;;  %v491_v27 = vadd.f32 %v490_v21, %v378_v5 }
 0x154   : > { %v540_v25 = vsel %vm507_vm11, %v485_v11, %v524_v19  ;;  %548 = vst [vmem:[%s1243_s28 + $0x28] sm:$0xff] %v532_v24  ;;  %v533_v29 = vsel %vm500_vm12, %v465_v16, %v517_v22 }
 0x155   : > { %556 = vst [vmem:[%s1243_s28 + $0x68] sm:$0xff] %v540_v25  ;;  %v541_v30 = vsel %vm508_vm13, %v489_v17, %v525_v23  ;;  %549 = vst [vmem:[%s1243_s28 + $0x30] sm:$0xff] %v533_v29  ;;  %vm501_vm14 = vcmp.gt.f32.partialorder %v467_v26, 0.0  ;;  %v518_v32 = vmul.f32 %v1239_v31, %v467_v26  ;;  %vm509_vm15 = vcmp.gt.f32.partialorder %v491_v27, 0.0 }
 0x156   : > { %557 = vst [vmem:[%s1243_s28 + $0x70] sm:$0xff] %v541_v30  ;;  %v526_v33 = vmul.f32 %v1239_v31, %v491_v27 }
 0x157   : > { %v534_v28 = vsel %vm501_vm14, %v467_v26, %v518_v32 }
 0x158   : > { %v542_v34 = vsel %vm509_vm15, %v491_v27, %v526_v33  ;;  %550 = vst [vmem:[%s1243_s28 + $0x38] sm:$0xff] %v534_v28 }
 0x159   : > { %558 = vst [vmem:[%s1243_s28 + $0x78] sm:$0xff] %v542_v34 }
 0x15a   : > { %902 = shalt.err (!%p899_p5)
}
 0x15b   : > { %s903_s0 = scalar_lea.hbm %s1282_s11, 2048  ;;  %s907_s5 = scalar_lea.hbm %s1338_s4, 4096 }
 0x15c   : > { %p904_p7 = scmp.ne.s32.totalorder %s1282_s11, %s903_s0  ;;  %p908_p9 = scmp.lt.s32.totalorder %s1282_s11, %s1338_s4 }
 0x15d   : > { %p909_p11 = scmp.lt.s32.totalorder %s907_s5, %s903_s0 }
 0x15e   : > { %p905_p4 = pnand %p904_p7, %p1101_p13 }
 0x15f   : > { %p910_p10 = por %p909_p11, %p908_p9 }
 0x160   : > { %p906_p6 = pneg %p905_p4 }
 0x162   : > { %p911_p1 = pnand %p910_p10, %p906_p6 }
 0x164   : > { %914 = shalt.err (!%p911_p1)
}
 0x165   : > { %s981_s28 = smov 256   ;;  %s982_s8 = smov 16  }
 0x166   : > { %761 = dma.vmem_to_hbm [thread:$0]  (%p1101_p13), %s1284_s7, 2048, %s1282_s11, %s560_s25, %s981_s28, %s981_s28, %s982_s8  }
 0x167 PF: > { %s590_s20 = sand.u32 1, %s953_s17   ;;  %p1354_p8 = scmp.ne.s32.totalorder %s1345_s27, 0 }
 0x168   : > { %p1355_p12 = scmp.ge.s32.totalorder %s973_s22, 2  ;;  %s591_s10 = scalar_lea.sflag [#allocation5], %s590_s20 }
 0x16a   : > { %p772_p0 = pnand %p1355_p12, %p1354_p8 }
 0x16c   : > { %p773_p2 = pneg %p772_p0 }
 0x16e   : > { %948 = dma.done.wait (%p773_p2), %s591_s10, 2048  }
 0x16f   : > { %950 = vsyncadd (%p773_p2), %s591_s10, 4294965248  ;;  %s22_s22 = sadd.s32 1, %s973_s22   ;;  %s1356_s17 = smov %s957_s18 }
 0x170   : > { %p19_p3 = scmp.ge.s32.totalorder %s22_s22, 4   ;;  %s1357_s18 = smov %s961_s19 }
 0x171   : > { %s1358_s19 = smov %s1110_s23  ;;  %s1359_s20 = smov %s969_s21 }
 0x172   : > { %s1360_s21 = smov %s1362_s6  ;;  %21 = sbr.rel (!%p19_p3) target bundleno = 9 (0x9), region = 85 }
 0x177   :  { %596 = vsyncpa [#allocation4], 1 }
 0x178   :  { %598 = vsyncpa [#allocation4 + $0x1], 1 }
 0x179   :  { %599 = vsyncpa [#allocation7], 1 }
 0x17a   :  { %600 = vsyncpa [#allocation5], 1 }
 0x17b   :  { %602 = vsyncpa [#allocation5 + $0x1], 1 }

</bundles_post_ra>
